<compile_context>
chip_gen: v7x
topology: tpu7x:2x2x1
jax: 0.10.0
libtpu: 0.0.40
codegen_flags: <defaults>
</compile_context>

<pallas_src>
import jax
import jax.numpy as jnp
from jax.experimental import pallas as pl
from jax.experimental.pallas import tpu as pltpu


def _mc_attention_kernel(x_ref, w_ref, mask_ref, b_ref, out_ref):
    """One grid step processes a (Bb, T, D) slab of the batch.

    x_ref   : (Bb, T, D) VMEM, native input dtype (never upcast as a slab)
    w_ref   : (1, 1, D)  VMEM, Linear weight row in x's dtype
    mask_ref: (Bb, 1, T) VMEM f32, dropout mask: 0.0 (dropped) or 1/(1-p) (kept)
    b_ref   : (1,)       SMEM f32, Linear bias
    out_ref : (Bb, 1, D) VMEM, context vectors
    """
    x = x_ref[...]                                    # (Bb, T, D) native dtype
    Bb = x.shape[0]
    D = x.shape[2]

    # Broadcast the (1, 1, D) weight row across the batch (leading dim only).
    w = jnp.broadcast_to(w_ref[...], (Bb, 1, D))      # (Bb, 1, D) native dtype

    # attention_scores = x @ W^T + b  -> (Bb, 1, T); MXU, f32 accumulation.
    scores = jnp.einsum(
        "bqd,btd->bqt", w, x, preferred_element_type=jnp.float32
    )
    # Monte-Carlo dropout on the scores (active, as in torch training mode).
    # Dropped scores become 0.0 (not -inf) before the softmax — this matches
    # nn.Dropout applied ahead of torch.softmax in the reference.
    scores = (scores + b_ref[0]) * mask_ref[...]      # (Bb, 1, T) f32

    # softmax over the sequence axis T (lane axis), normalization deferred.
    m = jnp.max(scores, axis=-1, keepdims=True)       # (Bb, 1, 1)
    e = jnp.exp(scores - m)                           # (Bb, 1, T)
    denom = jnp.sum(e, axis=-1, keepdims=True)        # (Bb, 1, 1)

    # unnormalized context = e @ x (contract T on the MXU, f32 accumulation),
    # then normalize the (Bb, 1, D) result once with an EUP reciprocal.
    ctx = jnp.einsum(
        "bqt,btd->bqd", e.astype(x.dtype), x, preferred_element_type=jnp.float32
    )                                                 # (Bb, 1, D) f32
    ctx = ctx * pl.reciprocal(denom, approx=True)
    out_ref[...] = ctx.astype(out_ref.dtype)


def _dropout_mask(key, shape, dropout_rate):
    """0.0 for dropped positions, 1/(1-p) for kept ones (torch scaling)."""
    dropout_rate = float(dropout_rate)
    if dropout_rate <= 0.0:
        return jnp.ones(shape, dtype=jnp.float32)
    if dropout_rate >= 1.0:        # torch: everything dropped (avoid div-by-zero)
        return jnp.zeros(shape, dtype=jnp.float32)
    keep = jax.random.bernoulli(key, p=1.0 - dropout_rate, shape=shape)
    scale = jnp.float32(1.0 / (1.0 - dropout_rate))
    return jnp.where(keep, scale, jnp.float32(0.0)).astype(jnp.float32)


def _vmem_capacity_bytes():
    """Physical VMEM per core; conservative fallback (v7x = 64 MiB)."""
    try:
        return int(pltpu.get_tpu_info().vmem_capacity_bytes)
    except Exception:
        return 64 * 1024 * 1024


def _pick_block_batch(B, T, D, itemsize, budget_bytes):
    """Per-step batch rows so the (double-buffered) x slab stays under budget.

    Always honors the budget (no full-batch fallback), keeps at least 2 grid
    steps when B >= 2 so the "parallel" grid axis can use both v7x
    TensorCores, and rounds to the dtype's sublane packing when large.
    """
    row_bytes = max(1, T * D * itemsize)
    bb = max(1, int(budget_bytes) // row_bytes)          # budget-capped
    bb = min(bb, max(1, pl.cdiv(B, 2)))                  # >=2 grid steps (v7x)
    pack = 8 * max(1, 4 // max(1, itemsize))             # 8 f32 / 16 bf16 / 32 int8
    if bb > pack:
        bb = (bb // pack) * pack
    return max(1, min(bb, B))


def monte_carlo_attention(lstm_output, weight, bias, *, dropout_rate=0.5, key=None):
    """lstm_output: [B, T, D] (D = 2*hidden_size), weight: [1, D], bias: [1]."""
    B, T, D = lstm_output.shape
    if key is None:
        key = jax.random.PRNGKey(0)

    mask = _dropout_mask(key, (B, 1, T), dropout_rate)            # (B, 1, T) f32
    w = weight.reshape(1, 1, D).astype(lstm_output.dtype)          # native dtype
    b = bias.reshape(1).astype(jnp.float32)

    itemsize = jnp.dtype(lstm_output.dtype).itemsize
    cap = _vmem_capacity_bytes()
    # Per-step x-slab budget ~cap/8 (double-buffered ~cap/4 plus small extras),
    # scoped-VMEM limit raised to ~3/4 of physical (headroom on every gen).
    budget = max(2 * 1024 * 1024, cap // 8)
    vmem_limit = max(32 * 1024 * 1024, min(cap * 3 // 4, 100 * 1024 * 1024))

    Bb = _pick_block_batch(B, T, D, itemsize, budget)
    grid = (pl.cdiv(B, Bb),)

    flops = 4 * B * T * D                                           # two contractions
    bytes_accessed = (B * T * D * itemsize       # x in
                      + B * T * 4                # mask in
                      + B * D * itemsize         # context out
                      + D * itemsize)            # weight row

    out = pl.pallas_call(
        _mc_attention_kernel,
        out_shape=jax.ShapeDtypeStruct((B, 1, D), lstm_output.dtype),
        grid=grid,
        in_specs=[
            pl.BlockSpec((Bb, T, D), lambda i: (i, 0, 0)),          # lstm_output
            pl.BlockSpec((1, 1, D), lambda i: (0, 0, 0)),           # Linear weight row
            pl.BlockSpec((Bb, 1, T), lambda i: (i, 0, 0)),          # dropout mask
            pl.BlockSpec(memory_space=pltpu.MemorySpace.SMEM),      # bias scalar
        ],
        out_specs=pl.BlockSpec((Bb, 1, D), lambda i: (i, 0, 0)),    # context block
        compiler_params=pltpu.CompilerParams(
            dimension_semantics=("parallel",),                      # batch rows independent
            vmem_limit_bytes=int(vmem_limit),
        ),
        cost_estimate=pl.CostEstimate(
            flops=int(flops),
            transcendentals=int(B * T + B),
            bytes_accessed=int(bytes_accessed),
        ),
    )(lstm_output, w, mask, b)

    # [B, 1, D] -> [B, D]  == context_vector.squeeze(1)
    return out.reshape(B, D)


def _reference(lstm_output, weight, bias, mask_bt):
    """Pure-JAX reference using the same dropout mask (shape [B, T])."""
    x = lstm_output.astype(jnp.float32)
    w = weight.reshape(-1).astype(jnp.float32)
    scores = jnp.einsum("btd,d->bt", x, w) + bias.astype(jnp.float32)[0]
    scores = scores * mask_bt
    attn = jax.nn.softmax(scores, axis=1)
    ctx = jnp.einsum("bt,btd->bd", attn, x)
    return ctx.astype(lstm_output.dtype)


if __name__ == "__main__":
    hidden_size = 16
    B, T = 2, 8
    D = hidden_size * 2  # Linear input features = hidden_size * 2
    dropout_rate = 0.5

    key = jax.random.PRNGKey(0)
    kx, kw, kb, kd = jax.random.split(key, 4)

    lstm_output = jax.random.normal(kx, (B, T, D), dtype=jnp.float32)

    # Deterministic Linear(2H, 1) parameters (torch-style uniform bound).
    bound = 1.0 / (D ** 0.5)
    weight = jax.random.uniform(kw, (1, D), minval=-bound, maxval=bound, dtype=jnp.float32)
    bias = jax.random.uniform(kb, (1,), minval=-bound, maxval=bound, dtype=jnp.float32)

    out = monte_carlo_attention(lstm_output, weight, bias,
                                dropout_rate=dropout_rate, key=kd)
    out = jax.block_until_ready(out)

    # Correctness check against a pure-JAX reference sharing the dropout mask.
    mask = _dropout_mask(kd, (B, 1, T), dropout_rate).reshape(B, T)
    ref = _reference(lstm_output, weight, bias, mask)

    assert out.shape == (B, D), out.shape
    assert bool(jnp.all(jnp.isfinite(out)))
    # Loose tolerance: default MXU f32 precision + approx reciprocal.
    err = float(jnp.max(jnp.abs(out.astype(jnp.float32) - ref.astype(jnp.float32))))
    assert bool(jnp.allclose(out, ref, rtol=2e-2, atol=2e-2)), err
    print("KERNEL_OK")
</pallas_src>

<mosaic_0001>
module attributes {stable_mosaic.version = 11 : i64} {
  func.func @_mc_attention_kernel(%arg0: i32, %arg1: memref<1x8x32xf32, #tpu.memory_space<vmem>>, %arg2: memref<1x1x32xf32, #tpu.memory_space<vmem>>, %arg3: memref<1x1x8xf32, #tpu.memory_space<vmem>>, %arg4: memref<1xf32, #tpu.memory_space<smem>>, %arg5: memref<1x1x32xf32, #tpu.memory_space<vmem>>) attributes {dimension_semantics = [#tpu.dimension_semantics<parallel>], iteration_bounds = array<i64: 2>, scalar_prefetch = 0 : i64, scratch_operands = 0 : i64, tpu.core_type = #tpu.core_type<tc>, window_params = [{transform_indices = @transform_0, window_bounds = array<i64: 1, 8, 32>}, {pipeline_mode = #tpu.pipeline_mode<synchronous>, transform_indices = @transform_1, window_bounds = array<i64: 1, 1, 32>}, {transform_indices = @transform_2, window_bounds = array<i64: 1, 1, 8>}, {transform_indices = @transform_3, window_bounds = array<i64: 1>}, {transform_indices = @transform_4, window_bounds = array<i64: 1, 1, 32>}]} {
    %c0 = arith.constant 0 : index
    %c0_0 = arith.constant 0 : index
    %c0_1 = arith.constant 0 : index
    %0 = vector.load %arg1[%c0, %c0_0, %c0_1] : memref<1x8x32xf32, #tpu.memory_space<vmem>>, vector<1x8x32xf32>
    %c0_2 = arith.constant 0 : index
    %c0_3 = arith.constant 0 : index
    %c0_4 = arith.constant 0 : index
    %1 = vector.load %arg2[%c0_2, %c0_3, %c0_4] : memref<1x1x32xf32, #tpu.memory_space<vmem>>, vector<1x1x32xf32>
    "tpu.trace_start"() <{level = 10 : i32, message = "bqd,btd->bqt"}> : () -> ()
    %cst = arith.constant dense<0.000000e+00> : vector<1x1x8xf32>
    %2 = tpu.matmul %1, %0, %cst {dimension_numbers = #tpu.dot_dimension_numbers<[2], [2], [1], [1], [0, 0, 0, 1, 1, 1], [0], [0]>} : vector<1x1x32xf32>, vector<1x8x32xf32>, vector<1x1x8xf32> -> vector<1x1x8xf32>
    "tpu.trace_stop"() : () -> ()
    %c0_5 = arith.constant 0 : index
    %3 = memref.load %arg4[%c0_5] : memref<1xf32, #tpu.memory_space<smem>>
    %4 = vector.broadcast %3 : f32 to vector<1x1x8xf32>
    %5 = arith.addf %2, %4 : vector<1x1x8xf32>
    %c0_6 = arith.constant 0 : index
    %c0_7 = arith.constant 0 : index
    %c0_8 = arith.constant 0 : index
    %6 = vector.load %arg3[%c0_6, %c0_7, %c0_8] : memref<1x1x8xf32, #tpu.memory_space<vmem>>, vector<1x1x8xf32>
    %7 = arith.mulf %5, %6 : vector<1x1x8xf32>
    %cst_9 = arith.constant dense<0xFF800000> : vector<1x1xf32>
    %8 = vector.multi_reduction <maximumf>, %7, %cst_9 [2] : vector<1x1x8xf32> to vector<1x1xf32>
    %9 = vector.shape_cast %8 : vector<1x1xf32> to vector<1x1x1xf32>
    %10 = vector.broadcast %9 : vector<1x1x1xf32> to vector<1x1x8xf32>
    %11 = arith.subf %7, %10 : vector<1x1x8xf32>
    %12 = math.exp %11 : vector<1x1x8xf32>
    %cst_10 = arith.constant dense<0.000000e+00> : vector<1x1xf32>
    %13 = vector.multi_reduction <add>, %12, %cst_10 [2] : vector<1x1x8xf32> to vector<1x1xf32>
    %14 = vector.shape_cast %13 : vector<1x1xf32> to vector<1x1x1xf32>
    "tpu.trace_start"() <{level = 10 : i32, message = "bqt,btd->bqd"}> : () -> ()
    %cst_11 = arith.constant dense<0.000000e+00> : vector<1x1x32xf32>
    %15 = tpu.matmul %12, %0, %cst_11 {dimension_numbers = #tpu.dot_dimension_numbers<[2], [1], [1], [2], [0, 0, 0, 1, 1, 2], [0], [0]>} : vector<1x1x8xf32>, vector<1x8x32xf32>, vector<1x1x32xf32> -> vector<1x1x32xf32>
    "tpu.trace_stop"() : () -> ()
    %16 = tpu.reciprocal %14 {approx = true} : vector<1x1x1xf32> -> vector<1x1x1xf32>
    %17 = vector.broadcast %16 : vector<1x1x1xf32> to vector<1x1x32xf32>
    %18 = arith.mulf %15, %17 : vector<1x1x32xf32>
    %c0_12 = arith.constant 0 : index
    %c0_13 = arith.constant 0 : index
    %c0_14 = arith.constant 0 : index
    %19 = vector.load %arg5[%c0_12, %c0_13, %c0_14] : memref<1x1x32xf32, #tpu.memory_space<vmem>>, vector<1x1x32xf32>
    tpu.vector_store %arg5[%c0_12, %c0_13, %c0_14], %18 {strides = array<i32>} : memref<1x1x32xf32, #tpu.memory_space<vmem>>, vector<1x1x32xf32>,
    return
  }
  func.func @transform_0(%arg0: i32) -> (i32, i32, i32) {
    %c0_i32 = arith.constant 0 : i32
    %c0_i32_0 = arith.constant 0 : i32
    %c0_i32_1 = arith.constant 0 : i32
    return %arg0, %c0_i32, %c0_i32_0 : i32, i32, i32
  }
  func.func @transform_1(%arg0: i32) -> (i32, i32, i32) {
    %c0_i32 = arith.constant 0 : i32
    %c0_i32_0 = arith.constant 0 : i32
    %c0_i32_1 = arith.constant 0 : i32
    %c0_i32_2 = arith.constant 0 : i32
    return %c0_i32, %c0_i32_0, %c0_i32_1 : i32, i32, i32
  }
  func.func @transform_2(%arg0: i32) -> (i32, i32, i32) {
    %c0_i32 = arith.constant 0 : i32
    %c0_i32_0 = arith.constant 0 : i32
    %c0_i32_1 = arith.constant 0 : i32
    return %arg0, %c0_i32, %c0_i32_0 : i32, i32, i32
  }
  func.func @transform_3(%arg0: i32) -> i32 {
    %c0_i32 = arith.constant 0 : i32
    %c0_i32_0 = arith.constant 0 : i32
    return %c0_i32 : i32
  }
  func.func @transform_4(%arg0: i32) -> (i32, i32, i32) {
    %c0_i32 = arith.constant 0 : i32
    %c0_i32_0 = arith.constant 0 : i32
    %c0_i32_1 = arith.constant 0 : i32
    return %arg0, %c0_i32, %c0_i32_0 : i32, i32, i32
  }
}

</mosaic_0001>

<bundles_post_ra>
// kernel: tpu_custom_call.1
= control target key start
LH: loop header
LB: loop body
LE: loop exit
PB: predicated region body
PF: predicated region fallthrough
CT: control target
= control target key end

     0   :  { %s865_s0 = inlined_call_operand.hbm [shape: f32[2,8,32], index: 0, kind: input, shape index: {}]   ;;  %s866_s1 = inlined_call_operand.vmem [shape: f32[1,1,32], index: 1, kind: input, shape index: {}]   ;;  %s867_s2 = inlined_call_operand.vmem [shape: f32[2,1,8], index: 2, kind: input, shape index: {}]   ;;  %s868_s3 = inlined_call_operand.<no memory space> [shape: f32[1], index: 3, kind: input, shape index: {}]   ;;  %s869_s4 = inlined_call_operand.hbm [shape: f32[2,1,32], index: 4, kind: output, shape index: {}]  }
   0x1   :  { %9 = sst [smem:[#allocation2]] %s868_s3 }
   0x2   :  { %10 = vsyncpa [#allocation4], 0 }
   0x3   :  { %12 = vsyncpa [#allocation4 + $0x1], 0 }
   0x4   :  { %13 = vsyncpa [#allocation5], 0 }
   0x5   :  { %15 = vsyncpa [#allocation5 + $0x1], 0  ;;  %s695_s17 = smov 0   ;;  %s697_s18 = smov 0  }
   0x6   :  { %s699_s19 = smov 0   ;;  %s701_s20 = smov 0  }
   0x7 LB: > { %s716_s3 = sadd.s32 4294967295, %s661_s20   ;;  %s486_s21 = sadd.s32 4294967294, %s661_s20   ;;  %s661_s20 = sphi %s701_s20, %s884_s20   ;;  %s657_s19 = sphi %s699_s19, %s883_s19   ;;  %s653_s18 = sphi %s697_s18, %s882_s18   ;;  %s649_s17 = sphi %s695_s17, %s881_s17  }
   0x8   : > { %s720_s22 = sadd.s32 1, %s661_s20   ;;  %s28_s23 = sadd.s32 1, %s657_s19 }
   0x9   : > { %s25_s24 = ssub.s32 %s661_s20, %s720_s22  ;;  %p35_p0 = scmp.ne.s32.totalorder %s657_s19, %s653_s18 }
   0xa   : > { %p26_p1 = scmp.eq.s32.totalorder %s25_s24, 0  ;;  %p36_p2 = scmp.eq.s32.totalorder %s661_s20, 0 }
   0xb   : > { %p41_p3 = scmp.ne.s32.totalorder %s653_s18, %s649_s17  ;;  %p42_p4 = scmp.eq.s32.totalorder %s716_s3, 0 }
   0xc   : > { %s732_s25 = scalar_select %p26_p1, %s657_s19, %s28_s23  }
   0xd   : > { %p734_p5 = por %p36_p2, %p35_p0  ;;  %p738_p6 = por %p42_p4, %p41_p3 }
   0xe   : > { %p133_p7 = scmp.eq.s32.totalorder %s716_s3, 1  ;;  %p139_p8 = scmp.eq.s32.totalorder %s486_s21, 1 }
   0xf   : > { %p525_p10 = scmp.lt.s32.totalorder %s661_s20, 2  ;;  %s165_s30 = sand.u32 1, %s657_s19  }
  0x10   : > { %p745_p11 = por %p133_p7, %p35_p0  ;;  %p749_p12 = por %p139_p8, %p41_p3 }
  0x11   : > { %s490_s5 = sshll.u32 %s661_s20, 7  ;;  %s489_s6 = sshll.u32 %s165_s30, 3 }
  0x12   : > { %s873_s28 = scalar_select %p745_p11, 1, 0 }
  0x13   : > { %s874_s29 = scalar_select %p749_p12, 1, 0 }
  0x14   : > { %s758_s9 = scalar_lea.hbm %s865_s0, %s490_s5  ;;  %s169_s10 = scalar_lea.vmem [#allocation3], %s489_s6 }
  0x15   : > { %s176_s11 = sshll.u32 %s169_s10, 4  ;;  %p762_p13 = pnand %p525_p10, %p734_p5  ;;  %s766_s11 = int_to_ptr.vmem [resolvable:$true] %s176_s11 }
  0x16   : > { %s166_s13 = scalar_lea.sflag [#allocation4], %s165_s30  ;;  %s565_s14 = scalar_lea.hbm %s758_s9, 128 }
  0x17   : > { %p566_p2 = scmp.ne.s32.totalorder %s758_s9, %s565_s14  ;;  %p567_p3 = pneg %p762_p13 }
  0x18   : > { %s570_s21 = scalar_lea.hbm %s865_s0, 256  ;;  %p571_p5 = scmp.lt.u32.totalorder %s758_s9, %s865_s0 }
  0x19   : > { %p568_p4 = pnand %p567_p3, %p566_p2  ;;  %p572_p8 = scmp.lt.u32.totalorder %s570_s21, %s565_s14 }
  0x1a   : > { %p574_p9 = scmp.lt.u32.totalorder %s565_s14, %s758_s9 }
  0x1b   : > { %p569_p7 = pneg %p568_p4  ;;  %p573_p10 = por %p572_p8, %p571_p5 }
  0x1d   : > { %p575_p0 = por %p574_p9, %p573_p10 }
  0x1f   : > { %p576_p1 = pnand %p575_p0, %p569_p7 }
  0x21   : > { %579 = shalt.err (!%p576_p1)
}
  0x22   : > { %s580_s26 = scalar_lea.vmem %s766_s11, 128  ;;  %s663_s30 = smov [#allocation3]  }
  0x23   : > { %p581_p2 = scmp.ne.s32.totalorder %s766_s11, %s580_s26  ;;  %s585_s5 = sshll.u32 %s663_s30, 4  ;;  %s586_s5 = int_to_ptr.vmem [resolvable:$false] %s585_s5 }
  0x24   : > { %s587_s6 = scalar_lea.vmem %s586_s5, 256  ;;  %p588_p11 = scmp.lt.s32.totalorder %s766_s11, %s586_s5 }
  0x25   : > { %p583_p4 = pnand %p581_p2, %p567_p3  ;;  %p589_p5 = scmp.lt.s32.totalorder %s587_s6, %s580_s26 }
  0x27   : > { %p584_p12 = pneg %p583_p4  ;;  %p590_p8 = por %p589_p5, %p588_p11 }
  0x29   : > { %p591_p9 = pnand %p590_p8, %p584_p12 }
  0x2b   : > { %594 = shalt.err (!%p591_p9)
}
  0x2c   : > { %520 = dma.hbm_to_vmem [thread:$0]  (!%p762_p13), %s758_s9, 128, %s766_s11, %s166_s13  }
  0x2d   : > { %p876_p0 = scmp.lt.s32.totalorder %s661_s20, 3  ;;  %p877_p1 = scmp.ge.s32.totalorder %s661_s20, 1 }
  0x2f   : > { %p188_p3 = pnand %p877_p1, %p876_p0 }
  0x30   : > { %s800_s7 = sand.u32 (!%p188_p3), 1, %s653_s18  }
  0x31   : > { %191 = sbr.rel (%p188_p3) target bundleno = 665 (0x299), region = 36  ;;  %s492_s8 = sshll.u32 (!%p188_p3), %s800_s7, 3 }
  0x32   : > { %s194_s10 = scalar_lea.sflag (!%p188_p3), [#allocation4], %s800_s7  ;;  %s197_s14 = scalar_lea.vmem (!%p188_p3), [#allocation3], %s492_s8 }
  0x38   : > { %640 = dma.done.wait (%p738_p6), %s194_s10, 128  }
  0x39   : > { %642 = vsyncadd (%p738_p6), %s194_s10, 4294967168  ;;  %v664_v0 = vmov 0.0   ;;  %vm665_vm0 = vmmov 0   ;;  %vm231_vm1 = vcmask 261120   ;;  %v227_v1 = vld [vmem:[%s197_s14] sm:$0xff]  ;;  %p224_p11 = scmp.lt.s32.totalorder %s716_s3, 1 }
  0x3a   : > { %503 = vmatprep.subr.mxu0 %v664_v0  ;;  %505 = vmatprep.mubr.msk.f32.mxu0 %vm665_vm0, %v664_v0  ;;  %v228_v2 = vld [vmem:[%s866_s1] sm:$0x1]  ;;  %s229_s27 = sld [smem:[#allocation2]]  ;;  %vm310_vm2 = vcmask 57344   ;;  %vm320_vm3 = vcmask 64512   ;;  %s496_s21 = sshll.u32 %s716_s3, 4 }
  0x3b   : > { %508 = vmatprep.subr.mxu1 %v664_v0  ;;  %510 = vmatprep.mubr.msk.f32.mxu1 %vm665_vm0, %v664_v0  ;;  %s225_s12 = scalar_select %p224_p11, %s716_s3, 1  ;;  %vm396_vm4 = vcmask 253952  }
  0x3c   : > { %504 = vmatpush3.xpose.msk.msra.mxu0 %vm231_vm1, %v227_v1  ;;  %509 = vmatpush3.msra.mxu1 %v227_v1  ;;  %s223_s23 = scalar_lea.vmem [#allocation6], %s800_s7  ;;  %s821_s5 = scalar_lea.hbm %s869_s4, %s496_s21 }
  0x3d   : > { %s226_s16 = scalar_lea.vmem %s867_s2, %s225_s12  ;;  %s411_s24 = sshll.u32 %s223_s23, 4  ;;  %s823_s24 = int_to_ptr.vmem [resolvable:$true] %s411_s24 }
  0x3e   : > { %v308_v5 = vld [vmem:[%s226_s16] sm:$0x1]  ;;  %s399_s6 = scalar_lea.sflag [#allocation5], %s800_s7  ;;  %s595_s3 = scalar_lea.vmem %s823_s24, 16 }
  0x3f   : > { %506 = vmatmul.mubr.msk.f32.vlgmr.msra.gmra.mrb[0].mxu0 %vm231_vm1, %v228_v2  ;;  %p596_p6 = scmp.ne.s32.totalorder %s823_s24, %s595_s3  ;;  %p878_p12 = scmp.ne.s32.totalorder %s873_s28, 0 }
  0x40   : > { %v230_v3 = vstv %s229_s27  ;;  %s666_s8 = smov [#allocation6]  }
  0x41   : > { %p597_p13 = pnand %p596_p6, %p878_p12  ;;  %s599_s10 = sshll.u32 %s666_s8, 4  ;;  %s600_s10 = int_to_ptr.vmem [resolvable:$false] %s599_s10 }
  0x42   : > { %s601_s14 = scalar_lea.vmem %s600_s10, 32  ;;  %p602_p10 = scmp.lt.s32.totalorder %s823_s24, %s600_s10 }
  0x43   : > { %p598_p7 = pneg %p597_p13  ;;  %p603_p2 = scmp.lt.s32.totalorder %s601_s14, %s595_s3 }
  0x45   : > { %p604_p4 = por %p603_p2, %p602_p10 }
  0x47   : > { %p605_p5 = pnand %p604_p4, %p598_p7 }
 0x112   : > { %v304_v4 = vpop.f32.mrb[0].mxu0 }
 0x113   : > { %v305_v6 = vadd.f32 %v304_v4, %v230_v3  ;;  %v507_v7 = vpop.f32.mrb[1].mxu0 }
 0x115   : > { %v309_v8 = vmul.f32 %v308_v5, %v305_v6 }
 0x117   : > { %v311_v9 = vsel %vm310_vm2, %v309_v8, -inf }
 0x118   : > { %312 = vmax.xlane.f32.xlu0 %v311_v9 }
 0x1a5   : > { %v313_v10 = vpop.xlane.xlu0 %312 }
 0x1a6   : > { %v314_v11 = vsub.f32 %v309_v8, %v313_v10 }
 0x1a8   : > { %v315_v12 = vmul.f32 1.442695, %v314_v11 }
 0x1aa   : > { %561 = vpow2.f32 %v315_v12 }
 0x1b4   : > { %v562_v13 = vpop.eup %561 }
 0x1b5   : > { %511 = vmatmul.mubr.msk.f32.vlgmr.msra.gmra.mrb[0].mxu1 %vm320_vm3, %v562_v13  ;;  %v317_v14 = vsel %vm310_vm2, %v562_v13, 0.0 }
 0x1b6   : > { %318 = vadd.xlane.f32.xlu0 %v317_v14 }
 0x243   : > { %v319_v15 = vpop.xlane.xlu0 %318 }
 0x244   : > { %563 = vrcp.f32 %v319_v15 }
 0x24e   : > { %v564_v16 = vpop.eup %563 }
 0x288   : > { %v390_v17 = vpop.f32.mrb[0].mxu1 }
 0x289   : > { %v395_v18 = vmul.f32 %v564_v16, %v390_v17  ;;  %v512_v19 = vpop.f32.mrb[1].mxu1 }
 0x28b   : > { %397 = vst.msk [vmem:[%s223_s23] sm:$0x1] %vm396_vm4, %v395_v18 }
 0x28c   : > { %608 = shalt.err (!%p605_p5)
}
 0x28d   : > { %s609_s7 = scalar_lea.hbm %s821_s5, 16  ;;  %s613_s27 = scalar_lea.hbm %s869_s4, 32 }
 0x28e   : > { %p610_p8 = scmp.ne.s32.totalorder %s821_s5, %s609_s7  ;;  %p614_p1 = scmp.lt.u32.totalorder %s821_s5, %s869_s4 }
 0x28f   : > { %p615_p3 = scmp.lt.u32.totalorder %s613_s27, %s609_s7  ;;  %p617_p6 = scmp.lt.u32.totalorder %s609_s7, %s821_s5 }
 0x290   : > { %p611_p9 = pnand %p610_p8, %p878_p12 }
 0x291   : > { %p616_p11 = por %p615_p3, %p614_p1 }
 0x292   : > { %p612_p0 = pneg %p611_p9 }
 0x293   : > { %p618_p13 = por %p617_p6, %p616_p11 }
 0x295   : > { %p619_p7 = pnand %p618_p13, %p612_p0 }
 0x297   : > { %622 = shalt.err (!%p619_p7)
}
 0x298   : > { %515 = dma.vmem_to_hbm [thread:$0]  (%p878_p12), %s823_s24, 16, %s821_s5, %s399_s6  }
 0x299 PF: > { %s423_s15 = sand.u32 1, %s649_s17   ;;  %p879_p10 = scmp.ne.s32.totalorder %s874_s29, 0 }
 0x29a   : > { %p880_p2 = scmp.ge.s32.totalorder %s661_s20, 2  ;;  %s424_s16 = scalar_lea.sflag [#allocation5], %s423_s15 }
 0x29c   : > { %p522_p4 = pnand %p880_p2, %p879_p10 }
 0x29e   : > { %644 = dma.done.wait (!%p522_p4), %s424_s16, 16  }
 0x29f   : > { %646 = vsyncadd (!%p522_p4), %s424_s16, 4294967280  ;;  %p18_p5 = scmp.ge.s32.totalorder %s720_s22, 4   ;;  %s881_s17 = smov %s653_s18 }
 0x2a0   : > { %s882_s18 = smov %s657_s19  ;;  %s883_s19 = smov %s732_s25 }
 0x2a1   : > { %s884_s20 = smov %s720_s22  ;;  %20 = sbr.rel (!%p18_p5) target bundleno = 7 (0x7), region = 84 }
 0x2a8   :  { %428 = vsyncpa [#allocation4], 1 }
 0x2a9   :  { %430 = vsyncpa [#allocation4 + $0x1], 1 }
 0x2aa   :  { %431 = vsyncpa [#allocation5], 1 }
 0x2ab   :  { %433 = vsyncpa [#allocation5 + $0x1], 1 }

</bundles_post_ra>
